<compile_context>
chip_gen: v6e
topology: v6e:2x2x1
jax: 0.10.0
libtpu: 0.0.40
codegen_flags: <defaults>
</compile_context>

<pallas_src>
import functools

import jax
import jax.numpy as jnp
import numpy as np
from jax.experimental import pallas as pl
from jax.experimental.pallas import tpu as pltpu


def _iqn_head_kernel(taus_ref, logits_ref, ipi_ref, w_e_ref, b_e_ref,
                     w_l_ref, b_l_ref, out_ref, *, compute_dtype):
    # taus_ref:   (TB*N, 1)  f32            taus for this batch tile, one row per (b, n)
    # logits_ref: (TB, 1, D) f32            hidden states for this batch tile
    # ipi_ref:    (1, C)     f32            pi * (1..C), resident
    # w_e_ref:    (C, D)     compute_dtype  embed weight (pre-transposed), resident
    # b_e_ref:    (1, D)     f32            resident
    # w_l_ref:    (A, D)     compute_dtype  last-layer weight (torch (out,in) layout), resident
    # b_l_ref:    (A, 1)     f32            resident
    # out_ref:    (TB, A, N) f32            quantile values, already (batch, action, sample)
    tb, a, n = out_ref.shape
    d = w_e_ref.shape[1]

    # Cosine features for the whole tile: (TB*N, C).  cos runs on the EUP in f32.
    cosines = jnp.cos(taus_ref[...] * ipi_ref[...])

    # Cosine-embedding Linear + ReLU.  One MXU matmul with M = TB*N rows, f32 accumulate.
    emb = jnp.dot(cosines.astype(compute_dtype), w_e_ref[...],
                  preferred_element_type=jnp.float32) + b_e_ref[...]
    emb = jnp.maximum(emb, 0.0)                      # (TB*N, D) f32
    emb3 = emb.reshape(tb, n, d)                     # (TB, N, D); N % 8 == 0 -> layout-preserving

    # Apply the hidden-state gate to the last-layer weight instead of to emb:
    #   out[b,a,n] = sum_d (logits[b,d] * Wl[a,d]) * emb[b,n,d] + bl[a]
    # so the batched matmul below emits the (TB, A, N) block already transposed
    # (torch's .transpose(1, 2)) -- no in-kernel transpose, no wrapper swapaxes.
    gate_w = logits_ref[...] * w_l_ref[...].astype(jnp.float32)        # (TB, A, D) f32
    res = jnp.einsum("bad,bnd->ban",
                     gate_w.astype(compute_dtype), emb3.astype(compute_dtype),
                     preferred_element_type=jnp.float32)               # (TB, A, N) f32
    out_ref[...] = (res + b_l_ref[...]).astype(out_ref.dtype)


def _iqn_head_pallas(logits, taus, w_embed, b_embed, w_last, b_last, *,
                     matmul_dtype=jnp.bfloat16, max_rows_per_step=512):
    B, D = logits.shape
    N = taus.shape[1]
    C = w_embed.shape[0]
    A = w_last.shape[0]

    # Pad the sample dim to a sublane multiple so the in-kernel (TB*N, D) -> (TB, N, D)
    # reshape stays layout-preserving.
    n_pad = ((N + 7) // 8) * 8
    if n_pad != N:
        taus = jnp.pad(taus, ((0, 0), (0, n_pad - N)))

    # Batch tile: TB*n_pad rows per step (fills the MXU M dim, amortizes grid-step
    # overhead) while keeping several parallel grid steps for v7x's two TensorCores
    # and staying far below v5e's 16 MiB scoped-VMEM default.
    tb = max(1, min(B, max_rows_per_step // n_pad))
    b_pad = ((B + tb - 1) // tb) * tb
    if b_pad != B:
        logits = jnp.pad(logits, ((0, b_pad - B), (0, 0)))
        taus = jnp.pad(taus, ((0, b_pad - B), (0, 0)))

    taus_flat = taus.reshape(b_pad * n_pad, 1)       # free (metadata-only) reshape
    logits3 = logits.reshape(b_pad, 1, D)            # free (metadata-only) reshape
    i_pi = (np.pi * jnp.arange(1, C + 1, dtype=jnp.float32)).reshape(1, C)

    kernel = functools.partial(_iqn_head_kernel, compute_dtype=matmul_dtype)
    out = pl.pallas_call(
        kernel,
        out_shape=jax.ShapeDtypeStruct((b_pad, A, n_pad), logits.dtype),
        grid=(b_pad // tb,),
        in_specs=[
            pl.BlockSpec((tb * n_pad, 1), lambda b: (b, 0)),     # taus (per batch tile)
            pl.BlockSpec((tb, 1, D), lambda b: (b, 0, 0)),       # logits (per batch tile)
            pl.BlockSpec((1, C), lambda b: (0, 0)),              # i*pi, resident
            pl.BlockSpec((C, D), lambda b: (0, 0)),              # embed W, resident
            pl.BlockSpec((1, D), lambda b: (0, 0)),              # embed bias, resident
            pl.BlockSpec((A, D), lambda b: (0, 0)),              # last W, resident
            pl.BlockSpec((A, 1), lambda b: (0, 0)),              # last bias, resident
        ],
        out_specs=pl.BlockSpec((tb, A, n_pad), lambda b: (b, 0, 0)),
        compiler_params=pltpu.CompilerParams(
            dimension_semantics=("parallel",)),
    )(taus_flat, logits3, i_pi,
      w_embed.astype(matmul_dtype), b_embed.astype(jnp.float32),
      w_last.astype(matmul_dtype), b_last.astype(jnp.float32))

    if b_pad != B or n_pad != N:
        out = out[:B, :, :N]
    return out


@functools.partial(jax.jit, static_argnames=("sample_size", "matmul_dtype"))
def implicit_quantile_forward(logits, key, w_embed, b_embed, w_last, b_last, *,
                              sample_size, matmul_dtype=jnp.bfloat16):
    """IQN head: logits -> ((B, A, sample_size) quantile values, taus)."""
    # TODO(synk): tau sampling could move in-kernel (pltpu.prng_seed + prng_random_bits)
    # to skip the threefry kernel + taus DMA; kept in the wrapper so the kernel stays
    # deterministic and testable against a pure-JAX reference.
    B = logits.shape[0]
    taus = jax.random.uniform(key, (B, sample_size), dtype=logits.dtype)
    out = _iqn_head_pallas(logits, taus, w_embed, b_embed, w_last, b_last,
                           matmul_dtype=matmul_dtype)
    return out, taus


def init_iqn_params(key, num_cosines, embedding_dim, action_dim):
    """nn.Linear-style init, stored directly in the kernel's layouts:
       w_embed (C, D) [torch (D, C) transposed], b_embed (1, D),
       w_last  (A, D) [torch (out, in) layout],  b_last  (A, 1)."""
    k1, k2, k3, k4 = jax.random.split(key, 4)
    be = 1.0 / np.sqrt(num_cosines)
    w_embed = jax.random.uniform(k1, (num_cosines, embedding_dim),
                                 minval=-be, maxval=be, dtype=jnp.float32)
    b_embed = jax.random.uniform(k2, (1, embedding_dim),
                                 minval=-be, maxval=be, dtype=jnp.float32)
    bl = 1.0 / np.sqrt(embedding_dim)
    w_last = jax.random.uniform(k3, (action_dim, embedding_dim),
                                minval=-bl, maxval=bl, dtype=jnp.float32)
    b_last = jax.random.uniform(k4, (action_dim, 1),
                                minval=-bl, maxval=bl, dtype=jnp.float32)
    return w_embed, b_embed, w_last, b_last


if __name__ == "__main__":
    key = jax.random.PRNGKey(0)
    k_params, k_logits, k_taus = jax.random.split(key, 3)

    # Small shapes consistent with the module defaults.
    B, N, C, D, A = 2, 8, 64, 64, 4
    w_e, b_e, w_l, b_l = init_iqn_params(k_params, C, D, A)
    # `logits` stands in for the output of the user-defined preprocess_net.
    logits = jax.random.normal(k_logits, (B, D), dtype=jnp.float32)

    def reference(lg, ts):
        i_pi = np.pi * jnp.arange(1, C + 1, dtype=jnp.float32)
        cos = jnp.cos(ts[:, :, None] * i_pi[None, None, :])               # (B, N, C)
        emb = jax.nn.relu(jnp.einsum("bnc,cd->bnd", cos, w_e) + b_e[0])   # (B, N, D)
        z = lg[:, None, :] * emb                                          # (B, N, D)
        out = jnp.einsum("bnd,ad->bna", z, w_l) + b_l[:, 0]               # (B, N, A)
        return jnp.swapaxes(out, 1, 2)                                    # (B, A, N)

    # Default bf16-matmul-input path and the f32 path, both vs. the f32 reference.
    for mm_dtype in (jnp.bfloat16, jnp.float32):
        out, taus = implicit_quantile_forward(
            logits, k_taus, w_e, b_e, w_l, b_l,
            sample_size=N, matmul_dtype=mm_dtype)
        jax.block_until_ready(out)
        assert out.shape == (B, A, N)
        assert taus.shape == (B, N)
        np.testing.assert_allclose(np.asarray(out), np.asarray(reference(logits, taus)),
                                   rtol=2e-2, atol=2e-2)

    # Larger case: exercises the multi-step grid (grid=3) and sample-dim padding (12 -> 16).
    B2, N2 = 96, 12
    logits2 = jax.random.normal(jax.random.PRNGKey(1), (B2, D), dtype=jnp.float32)
    out2, taus2 = implicit_quantile_forward(
        logits2, jax.random.PRNGKey(2), w_e, b_e, w_l, b_l, sample_size=N2)
    jax.block_until_ready(out2)
    assert out2.shape == (B2, A, N2)
    assert taus2.shape == (B2, N2)
    np.testing.assert_allclose(np.asarray(out2), np.asarray(reference(logits2, taus2)),
                               rtol=2e-2, atol=2e-2)

    print("KERNEL_OK")
</pallas_src>

<mosaic_0001>
module attributes {stable_mosaic.version = 11 : i64} {
  func.func @_iqn_head_kernel(%arg0: i32, %arg1: memref<16x1xf32, #tpu.memory_space<vmem>>, %arg2: memref<2x1x64xf32, #tpu.memory_space<vmem>>, %arg3: memref<1x64xf32, #tpu.memory_space<vmem>>, %arg4: memref<64x64xbf16, #tpu.memory_space<vmem>>, %arg5: memref<1x64xf32, #tpu.memory_space<vmem>>, %arg6: memref<4x64xbf16, #tpu.memory_space<vmem>>, %arg7: memref<4x1xf32, #tpu.memory_space<vmem>>, %arg8: memref<2x4x8xf32, #tpu.memory_space<vmem>>) attributes {dimension_semantics = [#tpu.dimension_semantics<parallel>], iteration_bounds = array<i64: 1>, scalar_prefetch = 0 : i64, scratch_operands = 0 : i64, tpu.core_type = #tpu.core_type<tc>, window_params = [{transform_indices = @transform_0, window_bounds = array<i64: 16, 1>}, {transform_indices = @transform_1, window_bounds = array<i64: 2, 1, 64>}, {pipeline_mode = #tpu.pipeline_mode<synchronous>, transform_indices = @transform_2, window_bounds = array<i64: 1, 64>}, {pipeline_mode = #tpu.pipeline_mode<synchronous>, transform_indices = @transform_3, window_bounds = array<i64: 64, 64>}, {pipeline_mode = #tpu.pipeline_mode<synchronous>, transform_indices = @transform_4, window_bounds = array<i64: 1, 64>}, {pipeline_mode = #tpu.pipeline_mode<synchronous>, transform_indices = @transform_5, window_bounds = array<i64: 4, 64>}, {pipeline_mode = #tpu.pipeline_mode<synchronous>, transform_indices = @transform_6, window_bounds = array<i64: 4, 1>}, {transform_indices = @transform_7, window_bounds = array<i64: 2, 4, 8>}]} {
    %c0 = arith.constant 0 : index
    %c0_0 = arith.constant 0 : index
    %0 = vector.load %arg1[%c0, %c0_0] : memref<16x1xf32, #tpu.memory_space<vmem>>, vector<16x1xf32>
    %c0_1 = arith.constant 0 : index
    %c0_2 = arith.constant 0 : index
    %1 = vector.load %arg3[%c0_1, %c0_2] : memref<1x64xf32, #tpu.memory_space<vmem>>, vector<1x64xf32>
    %2 = vector.broadcast %0 : vector<16x1xf32> to vector<16x64xf32>
    %3 = vector.broadcast %1 : vector<1x64xf32> to vector<16x64xf32>
    %4 = arith.mulf %2, %3 : vector<16x64xf32>
    %5 = math.cos %4 : vector<16x64xf32>
    %6 = arith.truncf %5 : vector<16x64xf32> to vector<16x64xbf16>
    %c0_3 = arith.constant 0 : index
    %c0_4 = arith.constant 0 : index
    %7 = vector.load %arg4[%c0_3, %c0_4] : memref<64x64xbf16, #tpu.memory_space<vmem>>, vector<64x64xbf16>
    %cst = arith.constant dense<0.000000e+00> : vector<16x64xf32>
    %8 = tpu.matmul %6, %7, %cst {dimension_numbers = #tpu.dot_dimension_numbers<[1], [0], [0], [1], [0, 0, 1, 1], [], []>} : vector<16x64xbf16>, vector<64x64xbf16>, vector<16x64xf32> -> vector<16x64xf32>
    %c0_5 = arith.constant 0 : index
    %c0_6 = arith.constant 0 : index
    %9 = vector.load %arg5[%c0_5, %c0_6] : memref<1x64xf32, #tpu.memory_space<vmem>>, vector<1x64xf32>
    %10 = vector.broadcast %9 : vector<1x64xf32> to vector<16x64xf32>
    %11 = arith.addf %8, %10 : vector<16x64xf32>
    %cst_7 = arith.constant 0.000000e+00 : f32
    %12 = vector.broadcast %cst_7 : f32 to vector<16x64xf32>
    %13 = arith.maximumf %11, %12 : vector<16x64xf32>
    %14 = vector.shape_cast %13 : vector<16x64xf32> to vector<2x8x64xf32>
    %c0_8 = arith.constant 0 : index
    %c0_9 = arith.constant 0 : index
    %c0_10 = arith.constant 0 : index
    %15 = vector.load %arg2[%c0_8, %c0_9, %c0_10] : memref<2x1x64xf32, #tpu.memory_space<vmem>>, vector<2x1x64xf32>
    %c0_11 = arith.constant 0 : index
    %c0_12 = arith.constant 0 : index
    %16 = vector.load %arg6[%c0_11, %c0_12] : memref<4x64xbf16, #tpu.memory_space<vmem>>, vector<4x64xbf16>
    %17 = arith.extf %16 : vector<4x64xbf16> to vector<4x64xf32>
    %18 = vector.shape_cast %17 : vector<4x64xf32> to vector<1x4x64xf32>
    %19 = vector.broadcast %15 : vector<2x1x64xf32> to vector<2x4x64xf32>
    %20 = vector.broadcast %18 : vector<1x4x64xf32> to vector<2x4x64xf32>
    %21 = arith.mulf %19, %20 : vector<2x4x64xf32>
    %22 = arith.truncf %21 : vector<2x4x64xf32> to vector<2x4x64xbf16>
    %23 = arith.truncf %14 : vector<2x8x64xf32> to vector<2x8x64xbf16>
    "tpu.trace_start"() <{level = 10 : i32, message = "bad,bnd->ban"}> : () -> ()
    %cst_13 = arith.constant dense<0.000000e+00> : vector<2x4x8xf32>
    %24 = tpu.matmul %22, %23, %cst_13 {dimension_numbers = #tpu.dot_dimension_numbers<[2], [2], [1], [1], [0, 0, 0, 1, 1, 1], [0], [0]>} : vector<2x4x64xbf16>, vector<2x8x64xbf16>, vector<2x4x8xf32> -> vector<2x4x8xf32>
    "tpu.trace_stop"() : () -> ()
    %c0_14 = arith.constant 0 : index
    %c0_15 = arith.constant 0 : index
    %25 = vector.load %arg7[%c0_14, %c0_15] : memref<4x1xf32, #tpu.memory_space<vmem>>, vector<4x1xf32>
    %26 = vector.shape_cast %25 : vector<4x1xf32> to vector<1x4x1xf32>
    %27 = vector.broadcast %26 : vector<1x4x1xf32> to vector<2x4x8xf32>
    %28 = arith.addf %24, %27 : vector<2x4x8xf32>
    %c0_16 = arith.constant 0 : index
    %c0_17 = arith.constant 0 : index
    %c0_18 = arith.constant 0 : index
    %29 = vector.load %arg8[%c0_16, %c0_17, %c0_18] : memref<2x4x8xf32, #tpu.memory_space<vmem>>, vector<2x4x8xf32>
    tpu.vector_store %arg8[%c0_16, %c0_17, %c0_18], %28 {strides = array<i32>} : memref<2x4x8xf32, #tpu.memory_space<vmem>>, vector<2x4x8xf32>,
    return
  }
  func.func @transform_0(%arg0: i32) -> (i32, i32) {
    %c0_i32 = arith.constant 0 : i32
    %c0_i32_0 = arith.constant 0 : i32
    return %arg0, %c0_i32 : i32, i32
  }
  func.func @transform_1(%arg0: i32) -> (i32, i32, i32) {
    %c0_i32 = arith.constant 0 : i32
    %c0_i32_0 = arith.constant 0 : i32
    %c0_i32_1 = arith.constant 0 : i32
    return %arg0, %c0_i32, %c0_i32_0 : i32, i32, i32
  }
  func.func @transform_2(%arg0: i32) -> (i32, i32) {
    %c0_i32 = arith.constant 0 : i32
    %c0_i32_0 = arith.constant 0 : i32
    %c0_i32_1 = arith.constant 0 : i32
    return %c0_i32, %c0_i32_0 : i32, i32
  }
  func.func @transform_3(%arg0: i32) -> (i32, i32) {
    %c0_i32 = arith.constant 0 : i32
    %c0_i32_0 = arith.constant 0 : i32
    %c0_i32_1 = arith.constant 0 : i32
    return %c0_i32, %c0_i32_0 : i32, i32
  }
  func.func @transform_4(%arg0: i32) -> (i32, i32) {
    %c0_i32 = arith.constant 0 : i32
    %c0_i32_0 = arith.constant 0 : i32
    %c0_i32_1 = arith.constant 0 : i32
    return %c0_i32, %c0_i32_0 : i32, i32
  }
  func.func @transform_5(%arg0: i32) -> (i32, i32) {
    %c0_i32 = arith.constant 0 : i32
    %c0_i32_0 = arith.constant 0 : i32
    %c0_i32_1 = arith.constant 0 : i32
    return %c0_i32, %c0_i32_0 : i32, i32
  }
  func.func @transform_6(%arg0: i32) -> (i32, i32) {
    %c0_i32 = arith.constant 0 : i32
    %c0_i32_0 = arith.constant 0 : i32
    %c0_i32_1 = arith.constant 0 : i32
    return %c0_i32, %c0_i32_0 : i32, i32
  }
  func.func @transform_7(%arg0: i32) -> (i32, i32, i32) {
    %c0_i32 = arith.constant 0 : i32
    %c0_i32_0 = arith.constant 0 : i32
    %c0_i32_1 = arith.constant 0 : i32
    return %arg0, %c0_i32, %c0_i32_0 : i32, i32, i32
  }
}

</mosaic_0001>

<bundles_post_ra>
// kernel: implicit_quantile_forward.1
= control target key start
LH: loop header
LB: loop body
LE: loop exit
PB: predicated region body
PF: predicated region fallthrough
CT: control target
= control target key end

     0   :  { %v589_v1 = vmov 0   ;;  %s774_s0 = inlined_call_operand.vmem [shape: f32[16,1], index: 0, kind: input, shape index: {}]   ;;  %s775_s1 = inlined_call_operand.vmem [shape: f32[2,1,64], index: 1, kind: input, shape index: {}]   ;;  %s776_s2 = inlined_call_operand.vmem [shape: f32[1,64], index: 2, kind: input, shape index: {}]   ;;  %s777_s3 = inlined_call_operand.vmem [shape: bf16[64,64], index: 3, kind: input, shape index: {}]   ;;  %s778_s4 = inlined_call_operand.vmem [shape: f32[1,64], index: 4, kind: input, shape index: {}]   ;;  %s779_s5 = inlined_call_operand.vmem [shape: bf16[4,64], index: 5, kind: input, shape index: {}]   ;;  %s780_s6 = inlined_call_operand.vmem [shape: f32[4,1], index: 6, kind: input, shape index: {}]   ;;  %s781_s7 = inlined_call_operand.hbm [shape: f32[2,4,8], index: 7, kind: output, shape index: {}]  }
   0x1   :  { %v28_v0 = vld [vmem:[%s774_s0] sm:$0xff]  ;;  %553 = vset.pattern.permute.xlu0 %v589_v1  ;;  %554 = vset.pattern.permute.xlu1 %v589_v1  ;;  %v29_v2 = vld [vmem:[%s774_s0 + $0x8] sm:$0xff] }
   0x2   :  { %33 = vperm.xlu0 %553, %v28_v0  }
   0x3   :  { %12 = vsyncpa [#allocation3], 0  ;;  %v555_v3 = vld [vmem:[%s777_s3 + $0x18] sm:$0xff]   ;;  %v590_v4 = vmov 0.0   ;;  %vm591_vm0 = vmmov 0   ;;  %v556_v5 = vld [vmem:[%s777_s3 + $0x10] sm:$0xff]  }
   0x4   :  { %509 = vmatprep.subr.bf16.mxu0 %v590_v4  ;;  %517 = vmatprep.mubr.msk.bf16.mxu0 %vm591_vm0, %v590_v4  ;;  %v557_v6 = vld [vmem:[%s777_s3 + $0x8] sm:$0xff]   ;;  %v558_v7 = vld [vmem:[%s777_s3] sm:$0xff]   ;;  %v592_v29 = vmov 683565275   ;;  %v593_v33 = vmov 2475754826  }
   0x5   :  { %510 = vmatpush3.bf16.msra.mxu0 %v555_v3  ;;  %521 = vmatprep.subr.bf16.mxu1 %v590_v4  ;;  %v481_v8 = vld [vmem:[%s776_s2] ss:$0 sm:$0xff]  ;;  %v594_v35 = vmov 2131351028   ;;  %v595_v37 = vmov 2102212464  }
   0x6   :  { %38 = vperm.xlu0 %553, %v29_v2   ;;  %511 = vmatprep.subr.bf16.mxu0 %v590_v4  ;;  %v596_v39 = vmov 920167782   ;;  %v597_v46 = vmov 1326507024  }
   0x7   :  { %523 = vmatprep.mubr.msk.bf16.mxu1 %vm591_vm0, %v590_v4 }
   0x9   :  { %512 = vmatpush3.bf16.msra.mxu0 %v556_v5 }
   0xa   :  { %513 = vmatprep.subr.bf16.mxu0 %v590_v4 }
   0xd   :  { %514 = vmatpush3.bf16.msra.mxu0 %v557_v6 }
   0xe   :  { %515 = vmatprep.subr.bf16.mxu0 %v590_v4 }
  0x11   :  { %516 = vmatpush3.bf16.msra.mxu0 %v558_v7 }
  0x7d   :  { %v34_v9 = vpop.permute.xlu0 %33 }
  0x7e   :  { %v671_v10 = vmul.f32 %v481_v8, %v34_v9 }
  0x80   :  { %v49_v11 = vand.u32 2147483647, %v671_v10  ;;  %v52_v12 = vand.u32 2139095040, %v671_v10  ;;  %vm51_vm15 = vcmp.lt.s32.totalorder %v671_v10, 0 }
  0x81   :  { %v39_v13 = vpop.permute.xlu0 %38 }
  0x82   :  { %v53_v14 = vshrl.u32 %v52_v12, 23  ;;  %v675_v15 = vmul.f32 %v481_v8, %v39_v13  ;;  %v56_v16 = vand.u32 8388607, %v49_v11 }
  0x84   :  { %v482_v17 = vadd.s32 4294967169, %v53_v14  ;;  %v155_v18 = vand.u32 2139095040, %v675_v15  ;;  %v57_v20 = vor.u32 8388608, %v56_v16  ;;  %v152_v22 = vand.u32 2147483647, %v675_v15 }
  0x86   :  { %v59_v19 = vadd.s32 1, %v482_v17  ;;  %v156_v21 = vshrl.u32 %v155_v18, 23  ;;  %v681_v27 = vshll.u32 %v57_v20, 8  ;;  %v159_v31 = vand.u32 8388607, %v152_v22 }
  0x88   :  { %vm60_vm1 = vcmp.gt.s32.totalorder %v59_v19, 0  ;;  %v486_v24 = vadd.s32 4294967169, %v156_v21  ;;  %v160_v61 = vor.u32 8388608, %v159_v31 }
  0x89   :  { %v61_v23 = vsel %vm60_vm1, %v59_v19, 0  ;;  %vm729_vm1 = vcmp.le.f32.partialorder %v49_v11, 0.7853982 }
  0x8a   :  { %v62_v25 = vshrl.u32 %v61_v23, 5  ;;  %v63_v26 = vand.u32 31, %v61_v23  ;;  %v162_v32 = vadd.s32 1, %v486_v24  ;;  %v200_v13 = vshll.u32 %v160_v61, 8 }
  0x8c   :  { %v64_v28 = vsub.s32 32, %v63_v26  ;;  %v66_v30 = vshll.u32 %v592_v29, %v63_v26  ;;  %v69_v34 = vshll.u32 %v593_v33, %v63_v26  ;;  %v72_v36 = vshll.u32 %v594_v35, %v63_v26 }
  0x8d   :  { %v75_v38 = vshll.u32 %v595_v37, %v63_v26  ;;  %v78_v40 = vshll.u32 %v596_v39, %v63_v26  ;;  %vm81_vm2 = vcmp.lt.s32.totalorder %v62_v25, 1  ;;  %vm83_vm3 = vcmp.lt.s32.totalorder %v62_v25, 3 }
  0x8e   :  { %v67_v41 = vshrl.u32 %v593_v33, %v64_v28  ;;  %v70_v42 = vshrl.u32 %v594_v35, %v64_v28  ;;  %v73_v43 = vshrl.u32 %v595_v37, %v64_v28  ;;  %v65_v44 = vshrl.u32 %v592_v29, %v64_v28 }
  0x8f   :  { %v76_v45 = vshrl.u32 %v596_v39, %v64_v28  ;;  %v79_v47 = vshrl.u32 %v597_v46, %v64_v28  ;;  %vm163_vm4 = vcmp.gt.s32.totalorder %v162_v32, 0  ;;  %vm84_vm5 = vcmp.lt.s32.totalorder %v62_v25, 4 }
  0x90   :  { %v68_v48 = vor.u32 %v67_v41, %v66_v30  ;;  %v71_v49 = vor.u32 %v70_v42, %v69_v34  ;;  %v74_v50 = vor.u32 %v73_v43, %v72_v36  ;;  %v164_v53 = vsel %vm163_vm4, %v162_v32, 0 }
  0x91   :  { %v77_v51 = vor.u32 %v76_v45, %v75_v38  ;;  %v80_v52 = vor.u32 %v79_v47, %v78_v40  ;;  %vm82_vm6 = vcmp.lt.s32.totalorder %v62_v25, 2  ;;  %v166_v0 = vand.u32 31, %v164_v53 }
  0x92   :  { %v85_v54 = vsel %vm81_vm2, %v65_v44, %v68_v48  ;;  %v86_v55 = vsel %vm84_vm5, %v74_v50, 2102212464  ;;  %v89_v56 = vsel %vm81_vm2, %v68_v48, %v71_v49  ;;  %v93_v57 = vsel %vm81_vm2, %v71_v49, %v74_v50 }
  0x93   :  { %v87_v58 = vsel %vm83_vm3, %v71_v49, %v86_v55  ;;  %v90_v59 = vsel %vm84_vm5, %v77_v51, 920167782  ;;  %v94_v60 = vsel %vm84_vm5, %v80_v52, 1326507024  ;;  %v165_v9 = vshrl.u32 %v164_v53, 5 }
  0x94   :  { %v91_v62 = vsel %vm83_vm3, %v74_v50, %v90_v59  ;;  %v95_v63 = vsel %vm83_vm3, %v77_v51, %v94_v60  ;;  %v88_v1 = vsel %vm82_vm6, %v85_v54, %v87_v58  ;;  %v167_v12 = vsub.s32 32, %v166_v0 }
  0x95   :  { %v92_v2 = vsel %vm82_vm6, %v89_v56, %v91_v62  ;;  %v96_v3 = vsel %vm82_vm6, %v93_v57, %v95_v63  ;;  %v104_v14 = vmul.u32 %v681_v27, %v88_v1  ;;  %v169_v16 = vshll.u32 %v592_v29, %v166_v0 }
  0x96   :  { %v694_v5 = vmul.u32.u64.low %v681_v27, %v96_v3  ;;  %v695_v6 = vmul.u32.u64.high %v681_v27, %v96_v3, %v694_v5  ;;  %v698_v7 = vmul.u32.u64.low %v681_v27, %v92_v2  ;;  %v699_v8 = vmul.u32.u64.high %v681_v27, %v92_v2, %v698_v7 }
  0x97   :  { %v172_v17 = vshll.u32 %v593_v33, %v166_v0  ;;  %v175_v18 = vshll.u32 %v594_v35, %v166_v0  ;;  %v170_v19 = vshrl.u32 %v593_v33, %v167_v12  ;;  %v173_v20 = vshrl.u32 %v594_v35, %v167_v12 }
  0x98   :  { %v176_v21 = vshrl.u32 %v595_v37, %v167_v12  ;;  %v178_v23 = vshll.u32 %v595_v37, %v166_v0  ;;  %vm106_vm7 = vc.u32 %v695_v6, %v698_v7  ;;  %v107_v24 = vadd.s32 1, %v699_v8 }
  0x99   :  { %v179_v25 = vshrl.u32 %v596_v39, %v167_v12  ;;  %v181_v26 = vshll.u32 %v596_v39, %v166_v0  ;;  %v171_v28 = vor.u32 %v170_v19, %v169_v16  ;;  %v174_v30 = vor.u32 %v173_v20, %v172_v17 }
  0x9a   :  { %v177_v31 = vor.u32 %v176_v21, %v175_v18  ;;  %v182_v32 = vshrl.u32 %v597_v46, %v167_v12  ;;  %v108_v27 = vsel %vm106_vm7, %v107_v24, %v699_v8  ;;  %vm184_vm8 = vcmp.lt.s32.totalorder %v165_v9, 1 }
  0x9b   :  { %v180_v34 = vor.u32 %v179_v25, %v178_v23  ;;  %vm187_vm9 = vcmp.lt.s32.totalorder %v165_v9, 4  ;;  %v109_v33 = vadd.s32 %v108_v27, %v104_v14  ;;  %vm186_vm10 = vcmp.lt.s32.totalorder %v165_v9, 3 }
  0x9c   :  { %v183_v35 = vor.u32 %v182_v32, %v181_v26  ;;  %v189_v36 = vsel %vm187_vm9, %v177_v31, 2102212464  ;;  %v168_v37 = vshrl.u32 %v592_v29, %v167_v12  ;;  %v192_v38 = vsel %vm184_vm8, %v171_v28, %v174_v30 }
  0x9d   :  { %v193_v40 = vsel %vm187_vm9, %v180_v34, 920167782  ;;  %v196_v41 = vsel %vm184_vm8, %v174_v30, %v177_v31  ;;  %v110_v42 = vadd.s32 536870912, %v109_v33  ;;  %vm185_vm11 = vcmp.lt.s32.totalorder %v165_v9, 2 }
  0x9e   :  { %v194_v39 = vsel %vm186_vm10, %v177_v31, %v193_v40  ;;  %v197_v43 = vsel %vm187_vm9, %v183_v35, 1326507024  ;;  %v188_v44 = vsel %vm184_vm8, %v168_v37, %v171_v28  ;;  %v190_v45 = vsel %vm186_vm10, %v174_v30, %v189_v36 }
  0x9f   :  { %v195_v46 = vsel %vm185_vm11, %v192_v38, %v194_v39  ;;  %v198_v47 = vsel %vm186_vm10, %v180_v34, %v197_v43  ;;  %v709_v48 = vshrl.u32 %v110_v42, 30  ;;  %v191_v54 = vsel %vm185_vm11, %v188_v44, %v190_v45 }
  0xa0   :  { %v199_v49 = vsel %vm185_vm11, %v196_v41, %v198_v47  ;;  %v711_v50 = vmul.u32.u64.low %v200_v13, %v195_v46  ;;  %v712_v51 = vmul.u32.u64.high %v200_v13, %v195_v46, %v711_v50  ;;  %v207_v57 = vmul.u32 %v200_v13, %v191_v54 }
  0xa1   :  { %v714_v52 = vmul.u32.u64.low %v200_v13, %v199_v49  ;;  %v715_v53 = vmul.u32.u64.high %v200_v13, %v199_v49, %v714_v52  ;;  %v112_v29 = vshll.u32 %v709_v48, 30  ;;  %v105_v8 = vadd.s32 %v698_v7, %v695_v6 }
  0xa2   :  { %v210_v56 = vadd.s32 1, %v712_v51  ;;  %vm154_vm2 = vcmp.lt.s32.totalorder %v675_v15, 0  ;;  %v135_v11 = vsub.s32 4, %v709_v48  ;;  %vm153_vm3 = vcmp.le.f32.partialorder %v152_v22, 0.7853982 }
  0xa3   :  { %v113_v55 = vsub.s32 %v109_v33, %v112_v29  ;;  %vm209_vm12 = vc.u32 %v715_v53, %v711_v50  ;;  %v208_v31 = vadd.s32 %v711_v50, %v715_v53  ;;  %vm141_vm10 = vweird.f32 %v671_v10 }
  0xa4   :  { %v211_v59 = vsel %vm209_vm12, %v210_v56, %v712_v51  ;;  %v136_v49 = vsel %vm51_vm15, %v135_v11, %v709_v48  ;;  %vm244_vm11 = vweird.f32 %v675_v15  ;;  %vm295_vm12 = vcmask 523264  }
  0xa5   :  { %v115_v58 = vsub.s32 0, %v113_v55  ;;  %v212_v60 = vadd.s32 %v211_v59, %v207_v57  ;;  %v138_v51 = vsel %vm729_vm1, 0, %v136_v49 }
  0xa6   :  { %v142_v54 = vand.u32 3, %v138_v51 }
  0xa7   :  { %v483_v61 = vmin.u32 %v115_v58, %v113_v55  ;;  %v213_v62 = vadd.s32 536870912, %v212_v60 }
  0xa8   :  { %vm144_vm4 = vcmp.eq.s32.totalorder %v142_v54, 0  ;;  %vm147_vm5 = vcmp.eq.s32.totalorder %v142_v54, 2  ;;  %vm143_vm6 = vcmp.lt.s32.totalorder %v142_v54, 2 }
  0xa9   :  { %v117_v63 = vclz %v483_v61  ;;  %v214_v0 = vshrl.u32 %v213_v62, 30 }
  0xab   :  { %v484_v1 = vadd.s32 4294967294, %v117_v63  ;;  %v215_v2 = vshll.u32 %v214_v0, 30  ;;  %v238_v47 = vsub.s32 4, %v214_v0 }
  0xad   :  { %vm485_vm13 = vcmp.lt.s32.totalorder %v484_v1, 0  ;;  %v216_v5 = vsub.s32 %v212_v60, %v215_v2  ;;  %v239_v52 = vsel %vm154_vm2, %v238_v47, %v214_v0 }
  0xae   :  { %v120_v3 = vsel %vm485_vm13, 0, %v484_v1  ;;  %v241_v29 = vsel %vm153_vm3, 0, %v239_v52  ;;  %vm462_vm13 = vcmask 60416  }
  0xaf   :  { %v121_v9 = vsub.s32 32, %v120_v3  ;;  %v125_v12 = vsub.s32 4294967266, %v120_v3  ;;  %v218_v13 = vsub.s32 0, %v216_v5  ;;  %v122_v14 = vshll.u32 %v113_v55, %v120_v3 }
  0xb0   :  { %v245_v56 = vand.u32 3, %v241_v29 }
  0xb1   :  { %v123_v16 = vshrl.u32 %v105_v8, %v121_v9  ;;  %v126_v17 = vadd.s32 127, %v125_v12  ;;  %v487_v18 = vmin.u32 %v218_v13, %v216_v5  ;;  %v364_v8 = vld [vmem:[%s780_s6] sm:$0xf] }
  0xb2   :  { %vm250_vm7 = vcmp.eq.s32.totalorder %v245_v56, 2  ;;  %vm247_vm8 = vcmp.eq.s32.totalorder %v245_v56, 0  ;;  %vm246_vm9 = vcmp.lt.s32.totalorder %v245_v56, 2  ;;  %367 = vperm.xlu1 %554, %v364_v8   ;;  %v490_v9 = vld [vmem:[%s778_s4] ss:$0 sm:$0xff] }
  0xb3   :  { %v124_v19 = vor.u32 %v123_v16, %v122_v14  ;;  %v127_v20 = vshll.u32 %v126_v17, 23  ;;  %v220_v21 = vclz %v487_v18  ;;  %v496_v18 = vld [vmem:[%s775_s1] ss:$0 sm:$0xff] }
  0xb5   :  { %v128_v23 = vor.u32 4788187, %v127_v20  ;;  %v488_v24 = vadd.s32 4294967294, %v220_v21  ;;  %v131_v26 = vcvt.s32.f32 %v124_v19 }
  0xb7   :  { %v129_v25 = vand.u32 2147483647, %v128_v23  ;;  %vm489_vm14 = vcmp.lt.s32.totalorder %v488_v24, 0 }
  0xb8   :  { %v223_v30 = vsel %vm489_vm14, 0, %v488_v24 }
  0xb9   :  { %v132_v28 = vmul.f32 %v131_v26, %v129_v25  ;;  %v224_v6 = vsub.s32 32, %v223_v30  ;;  %v228_v7 = vsub.s32 4294967266, %v223_v30  ;;  %v225_v27 = vshll.u32 %v216_v5, %v223_v30  ;;  %v497_v30 = vld [vmem:[%s775_s1 + $0x1] ss:$0 sm:$0xff]  ;;  %s598_s1 = smov [#allocation2]  }
  0xba   :  { %s470_s6 = sshll.u32 %s598_s1, 4  ;;  %s471_s6 = int_to_ptr.vmem [resolvable:$true] %s470_s6 }
  0xbb   :  { %v133_v32 = vxor.u32 2147483648, %v132_v28  ;;  %v226_v34 = vshrl.u32 %v208_v31, %v224_v6  ;;  %v229_v33 = vadd.s32 127, %v228_v7  ;;  %s567_s20 = scalar_lea.vmem %s471_s6, 128  ;;  %p572_p1 = scmp.lt.s32.totalorder %s471_s6, %s471_s6 }
  0xbc   :  { %p568_p0 = scmp.ne.s32.totalorder %s471_s6, %s567_s20  ;;  %p573_p2 = scmp.lt.s32.totalorder %s567_s20, %s567_s20 }
  0xbd   :  { %v134_v35 = vsel %vm51_vm15, %v133_v32, %v132_v28  ;;  %v227_v37 = vor.u32 %v226_v34, %v225_v27  ;;  %v230_v38 = vshll.u32 %v229_v33, 23 }
  0xbe   :  { %v137_v40 = vsel %vm729_vm1, %v671_v10, %v134_v35  ;;  %v344_v10 = vld [vmem:[%s779_s5] sm:$0x3]  ;;  %p574_p3 = por %p573_p2, %p572_p1 }
  0xbf   :  { %v231_v41 = vor.u32 4788187, %v230_v38  ;;  %559 = vcosq.f32 %v137_v40  ;;  %v234_v39 = vcvt.s32.f32 %v227_v37  ;;  %v345_v16 = vunpack.c.l.bf16 %v344_v10 }
  0xc0   :  { %561 = vsinq.f32 %v137_v40  ;;  %p575_p4 = pnand %p574_p3, %p568_p0 }
  0xc1   :  { %v232_v42 = vand.u32 2147483647, %v231_v41  ;;  %v358_v25 = vmul.f32 %v496_v18, %v345_v16  ;;  %v359_v31 = vmul.f32 %v497_v30, %v345_v16 }
  0xc3   :  { %v235_v43 = vmul.f32 %v234_v39, %v232_v42  ;;  %v360_v28 = vpack.c.bf16 %v358_v25, %v358_v25  ;;  %v361_v7 = vpack.c.bf16 %v359_v31, %v359_v31 }
  0xc5   :  { %v236_v44 = vxor.u32 2147483648, %v235_v43 }
  0xc7   :  { %v237_v45 = vsel %vm154_vm2, %v236_v44, %v235_v43 }
  0xc8   :  { %v240_v46 = vsel %vm153_vm3, %v675_v15, %v237_v45 }
  0xc9   :  { %563 = vcosq.f32 %v240_v46 }
  0xca   :  { %565 = vsinq.f32 %v240_v46 }
  0xcc   :  { %v560_v50 = vpop.eup %559 }
  0xcd   :  { %v562_v53 = vpop.eup %561  ;;  %v148_v22 = vxor.u32 2147483648, %v560_v50 }
  0xce   :  { %v145_v55 = vxor.u32 2147483648, %v562_v53 }
  0xcf   :  { %v149_v59 = vsel %vm147_vm5, %v148_v22, %v562_v53 }
  0xd0   :  { %v146_v58 = vsel %vm144_vm4, %v560_v50, %v145_v55 }
  0xd1   :  { %v150_v62 = vsel %vm143_vm6, %v146_v58, %v149_v59 }
  0xd2   :  { %v151_v2 = vsel %vm141_vm10, nan, %v150_v62 }
  0xd6   :  { %v564_v57 = vpop.eup %563 }
  0xd7   :  { %v566_v60 = vpop.eup %565  ;;  %v251_v61 = vxor.u32 2147483648, %v564_v57 }
  0xd8   :  { %v248_v48 = vxor.u32 2147483648, %v566_v60 }
  0xd9   :  { %v252_v63 = vsel %vm250_vm7, %v251_v61, %v566_v60 }
  0xda   :  { %v249_v0 = vsel %vm247_vm8, %v564_v57, %v248_v48 }
  0xdb   :  { %v253_v1 = vsel %vm246_vm9, %v249_v0, %v252_v63 }
  0xdc   :  { %v254_v3 = vsel %vm244_vm11, nan, %v253_v1 }
  0xdd   :  { %v255_v5 = vpack.c.bf16 %v254_v3, %v151_v2 }
  0xdf   :  { %518 = vmatmul.mubr.msk.bf16.vlgmr.msra.gmra.mxu0 %vm295_vm12, %v255_v5 }
 0x12d   :  { %v368_v32 = vpop.permute.xlu1 %367 }
 0x19f   :  { %v333_v12 = vpop.f32.mrf.mxu0 }
 0x1a0   :  { %v334_v15 = vadd.f32 %v490_v9, %v333_v12 }
 0x1a1   :  { %v519_v13 = vpop.f32.mrf.mxu0 }
 0x1a2   :  { %v340_v14 = vmax.f32 %v334_v15, 0.0 }
 0x1a3   :  { %v336_v17 = vpop.f32.mrf.mxu0 }
 0x1a4   :  { %v362_v19 = vpack.c.bf16 %v340_v14, %v340_v14  ;;  %v337_v20 = vadd.f32 %v490_v9, %v336_v17 }
 0x1a5   :  { %v520_v21 = vpop.f32.mrf.mxu0 }
 0x1a6   :  { %v341_v23 = vmax.f32 %v337_v20, 0.0  ;;  %v374_v24 = vsel %vm295_vm12, %v362_v19, 0 }
 0x1a7   :  { %522 = vmatpush3.bf16.xpose.msra.mxu1 %v374_v24 }
 0x1a8   :  { %527 = vmatprep.subr.bf16.mxu1 %v590_v4  ;;  %v363_v26 = vpack.c.bf16 %v341_v23, %v341_v23 }
 0x1aa   :  { %v420_v6 = vsel %vm295_vm12, %v363_v26, 0 }
 0x1ae   :  { %524 = vmatmul.mubr.msk.bf16.vlgmr.msra.gmra.mxu1 %vm295_vm12, %v360_v28 }
 0x1af   :  { %528 = vmatpush3.bf16.xpose.msra.mxu1 %v420_v6  ;;  %529 = vmatprep.mubr.msk.bf16.mxu1 %vm591_vm0, %v590_v4 }
 0x1b6   :  { %530 = vmatmul.mubr.msk.bf16.vlgmr.msra.gmra.mxu1 %vm295_vm12, %v361_v7 }
 0x26e   :  { %v410_v27 = vpop.f32.mrf.mxu1 }
 0x26f   :  { %v411_v34 = vadd.f32 %v410_v27, %v368_v32 }
 0x270   :  { %v525_v33 = vpop.f32.mrf.mxu1 }
 0x271   :  { %463 = vst.msk [vmem:[#allocation2] sm:$0xf] %vm462_vm13, %v411_v34 }
 0x272   :  { %v413_v35 = vpop.f32.mrf.mxu1 }
 0x274   :  { %v526_v36 = vpop.f32.mrf.mxu1 }
 0x276   :  { %v456_v37 = vpop.f32.mrf.mxu1 }
 0x277   :  { %v457_v38 = vadd.f32 %v456_v37, %v368_v32 }
 0x278   :  { %v531_v40 = vpop.f32.mrf.mxu1 }
 0x279   :  { %464 = vst.msk [vmem:[#allocation2 + $0x4] sm:$0xf] %vm462_vm13, %v457_v38 }
 0x27a   :  { %v459_v41 = vpop.f32.mrf.mxu1 }
 0x27b   :  { %578 = shalt.err (!%p575_p4)
}
 0x27c   :  { %s599_s21 = smov 64   ;;  %s600_s22 = smov 4   ;;  %v532_v4 = vpop.f32.mrf.mxu1 }
 0x27d   :  { %476 = dma.vmem_to_hbm [thread:$0]  %s471_s6, 128, %s781_s7, [#allocation3], %s599_s21, %s599_s21, %s600_s22  }
 0x27e   :  { %587 = dma.done.wait [#allocation3], 128  }
 0x27f   :  { %588 = vsyncadd [#allocation3], 4294967168 }
 0x280   :  { %480 = vsyncpa [#allocation3], 1 }

</bundles_post_ra>
